<compile_context>
chip_gen: v5e
topology: v5e:2x2
jax: 0.10.0
libtpu: 0.0.40
codegen_flags: <defaults>
</compile_context>

<pallas_src>
import functools

import jax
import jax.numpy as jnp
from jax.experimental import pallas as pl
from jax.experimental.pallas import tpu as pltpu


def _round_up(x, m):
    return (x + m - 1) // m * m


def _dense_softmax_kernel(text_avg_ref, asp_avg_ref, w_text_ref, w_asp_ref, b_ref,
                          out_ref, *, apply_softmax):
    # logits = concat(text_avg, asp_avg) @ W.T + b, expressed as two matmuls
    # (mathematically identical, avoids an in-kernel concatenate). f32 in, f32 accumulate.
    logits = (jnp.dot(text_avg_ref[...], w_text_ref[...],
                      preferred_element_type=jnp.float32)
              + jnp.dot(asp_avg_ref[...], w_asp_ref[...],
                        preferred_element_type=jnp.float32)
              + b_ref[...])                                           # (Bt, P_pad)

    if apply_softmax:
        # Padded logit lanes carry bias = -1e30 -> exp underflows to 0 -> ignored.
        m = jnp.max(logits, axis=-1, keepdims=True)
        e = jnp.exp(logits - m)
        # Exact divide (tiny tensor): rows sum to 1 at f32 precision.
        out_ref[...] = e / jnp.sum(e, axis=-1, keepdims=True)
    else:
        out_ref[...] = logits


@functools.partial(jax.jit, static_argnames=("use_softmax", "block_b"))
def ae_context_avg(text_indices, aspect_indices,
                   embedding_matrix, aspect_embedding_matrix,
                   dense_w, dense_b, *, use_softmax=True, block_b=512):
    """text_indices: (B, L) int32, aspect_indices: (B, La) int32.
    embedding_matrix: (V, E), aspect_embedding_matrix: (Va, E).
    dense_w: (P, 2E) [torch nn.Linear layout], dense_b: (P,)."""
    B, _ = text_indices.shape
    E = embedding_matrix.shape[1]
    P = dense_w.shape[0]

    # Lane-dense padding of the polarity dim only; batch tiling (Bt multiple of 8).
    P_pad = _round_up(P, 128)
    Bt = min(_round_up(B, 8), _round_up(block_b, 8))
    B_pad = _round_up(B, Bt)

    # --- Glue (plain JAX, fused by XLA): gather + masked mean ------------------------------
    ti = jnp.pad(text_indices, ((0, B_pad - B), (0, 0)))
    ai = jnp.pad(aspect_indices, ((0, B_pad - B), (0, 0)))
    tmask = (ti != 0).astype(jnp.float32)                              # (B_pad, L)
    amask = (ai != 0).astype(jnp.float32)                              # (B_pad, La)
    # Fold 1/len into the mask weights (clamped so all-pad / batch-padding rows stay finite).
    tw = tmask / jnp.maximum(jnp.sum(tmask, axis=1, keepdims=True), 1.0)
    aw = amask / jnp.maximum(jnp.sum(amask, axis=1, keepdims=True), 1.0)
    # gather -> scale -> reduce fuses in XLA; only (B_pad, E) crosses the pallas boundary.
    text_avg = jnp.sum(jnp.take(embedding_matrix.astype(jnp.float32), ti, axis=0)
                       * tw[..., None], axis=1)                        # (B_pad, E)
    asp_avg = jnp.sum(jnp.take(aspect_embedding_matrix.astype(jnp.float32), ai, axis=0)
                      * aw[..., None], axis=1)                         # (B_pad, E)

    # Split transposed dense weight into text / aspect halves; zero-pad P -> P_pad columns.
    w_text = jnp.zeros((E, P_pad), jnp.float32).at[:, :P].set(
        dense_w[:, :E].T.astype(jnp.float32))
    w_asp = jnp.zeros((E, P_pad), jnp.float32).at[:, :P].set(
        dense_w[:, E:].T.astype(jnp.float32))
    # Padded polarity lanes get -1e30 bias so the in-kernel softmax assigns them ~0.
    bias = jnp.full((1, P_pad), -1e30, jnp.float32).at[0, :P].set(
        dense_b.astype(jnp.float32))

    # TODO(synk): Dropout is inference-mode identity and is omitted.
    grid = (B_pad // Bt,)
    kernel = functools.partial(_dense_softmax_kernel, apply_softmax=use_softmax)

    out = pl.pallas_call(
        kernel,
        out_shape=jax.ShapeDtypeStruct((B_pad, P_pad), jnp.float32),
        grid=grid,
        in_specs=[
            pl.BlockSpec((Bt, E), lambda i: (i, 0)),      # context averages (batch-tiled)
            pl.BlockSpec((Bt, E), lambda i: (i, 0)),      # aspect averages  (batch-tiled)
            pl.BlockSpec((E, P_pad), lambda i: (0, 0)),   # w_text (VMEM-resident)
            pl.BlockSpec((E, P_pad), lambda i: (0, 0)),   # w_asp  (VMEM-resident)
            pl.BlockSpec((1, P_pad), lambda i: (0, 0)),   # bias   (VMEM-resident)
        ],
        out_specs=pl.BlockSpec((Bt, P_pad), lambda i: (i, 0)),
        compiler_params=pltpu.CompilerParams(
            # Batch axis is independent; per-step VMEM is tiny so no vmem_limit override
            # is needed (v7x's 64 MiB included).
            dimension_semantics=("parallel",),
        ),
    )(text_avg, asp_avg, w_text, w_asp, bias)

    return out[:B, :P]


def _reference(text_indices, aspect_indices, emb, aemb, w, b):
    te = jnp.take(emb, text_indices, axis=0)
    ae = jnp.take(aemb, aspect_indices, axis=0)
    tm = (text_indices != 0).astype(jnp.float32)
    am = (aspect_indices != 0).astype(jnp.float32)
    tavg = jnp.sum(te * tm[..., None], 1) / jnp.sum(tm, 1, keepdims=True)
    aavg = jnp.sum(ae * am[..., None], 1) / jnp.sum(am, 1, keepdims=True)
    feat = jnp.concatenate([tavg, aavg], -1)
    logits = feat @ w.T + b
    return jax.nn.softmax(logits, axis=-1)


if __name__ == "__main__":
    key = jax.random.PRNGKey(0)
    k_emb, k_aemb, k_w, k_b = jax.random.split(key, 4)

    # Small synthetic config: vocab=32, aspect vocab=16, embed_dim=32,
    # polarities_dim=3, batch=2, seq=8, aspect seq=4.
    V, Va, E, P = 32, 16, 32, 3
    B, L, La = 2, 8, 4

    embedding_matrix = jax.random.normal(k_emb, (V, E), dtype=jnp.float32)
    embedding_matrix = embedding_matrix.at[0].set(0.0)        # padding row
    aspect_embedding_matrix = jax.random.normal(k_aemb, (Va, E), dtype=jnp.float32)
    aspect_embedding_matrix = aspect_embedding_matrix.at[0].set(0.0)
    dense_w = jax.random.normal(k_w, (P, 2 * E), dtype=jnp.float32) * 0.1
    dense_b = jax.random.normal(k_b, (P,), dtype=jnp.float32) * 0.1

    # Indices with trailing zero-padding (idx 0 is the pad token).
    text_indices = jnp.array([[3, 7, 12, 5, 9, 0, 0, 0],
                              [1, 2, 3, 4, 5, 6, 7, 8]], dtype=jnp.int32)
    aspect_indices = jnp.array([[4, 2, 0, 0],
                                [7, 0, 0, 0]], dtype=jnp.int32)

    out = ae_context_avg(text_indices, aspect_indices,
                         embedding_matrix, aspect_embedding_matrix,
                         dense_w, dense_b)
    out = jax.block_until_ready(out)

    ref = _reference(text_indices, aspect_indices,
                     embedding_matrix, aspect_embedding_matrix,
                     dense_w, dense_b)
    assert out.shape == (B, P)
    # Full f32 path with exact softmax normalization -> tight tolerances.
    assert jnp.allclose(out, ref, atol=2e-3, rtol=2e-3), (out, ref)
    assert jnp.allclose(jnp.sum(out, axis=-1), 1.0, atol=1e-3)
    print("KERNEL_OK")
</pallas_src>

<mosaic_0001>
module attributes {stable_mosaic.version = 11 : i64} {
  func.func @_dense_softmax_kernel(%arg0: i32, %arg1: memref<8x32xf32, #tpu.memory_space<vmem>>, %arg2: memref<8x32xf32, #tpu.memory_space<vmem>>, %arg3: memref<32x128xf32, #tpu.memory_space<vmem>>, %arg4: memref<32x128xf32, #tpu.memory_space<vmem>>, %arg5: memref<1x128xf32, #tpu.memory_space<vmem>>, %arg6: memref<8x128xf32, #tpu.memory_space<vmem>>) attributes {dimension_semantics = [#tpu.dimension_semantics<parallel>], iteration_bounds = array<i64: 1>, scalar_prefetch = 0 : i64, scratch_operands = 0 : i64, tpu.core_type = #tpu.core_type<tc>, window_params = [{transform_indices = @transform_0, window_bounds = array<i64: 8, 32>}, {transform_indices = @transform_1, window_bounds = array<i64: 8, 32>}, {pipeline_mode = #tpu.pipeline_mode<synchronous>, transform_indices = @transform_2, window_bounds = array<i64: 32, 128>}, {pipeline_mode = #tpu.pipeline_mode<synchronous>, transform_indices = @transform_3, window_bounds = array<i64: 32, 128>}, {pipeline_mode = #tpu.pipeline_mode<synchronous>, transform_indices = @transform_4, window_bounds = array<i64: 1, 128>}, {transform_indices = @transform_5, window_bounds = array<i64: 8, 128>}]} {
    %c0 = arith.constant 0 : index
    %c0_0 = arith.constant 0 : index
    %0 = vector.load %arg1[%c0, %c0_0] : memref<8x32xf32, #tpu.memory_space<vmem>>, vector<8x32xf32>
    %c0_1 = arith.constant 0 : index
    %c0_2 = arith.constant 0 : index
    %1 = vector.load %arg3[%c0_1, %c0_2] : memref<32x128xf32, #tpu.memory_space<vmem>>, vector<32x128xf32>
    %cst = arith.constant dense<0.000000e+00> : vector<8x128xf32>
    %2 = tpu.matmul %0, %1, %cst {dimension_numbers = #tpu.dot_dimension_numbers<[1], [0], [0], [1], [0, 0, 1, 1], [], []>} : vector<8x32xf32>, vector<32x128xf32>, vector<8x128xf32> -> vector<8x128xf32>
    %c0_3 = arith.constant 0 : index
    %c0_4 = arith.constant 0 : index
    %3 = vector.load %arg2[%c0_3, %c0_4] : memref<8x32xf32, #tpu.memory_space<vmem>>, vector<8x32xf32>
    %c0_5 = arith.constant 0 : index
    %c0_6 = arith.constant 0 : index
    %4 = vector.load %arg4[%c0_5, %c0_6] : memref<32x128xf32, #tpu.memory_space<vmem>>, vector<32x128xf32>
    %cst_7 = arith.constant dense<0.000000e+00> : vector<8x128xf32>
    %5 = tpu.matmul %3, %4, %cst_7 {dimension_numbers = #tpu.dot_dimension_numbers<[1], [0], [0], [1], [0, 0, 1, 1], [], []>} : vector<8x32xf32>, vector<32x128xf32>, vector<8x128xf32> -> vector<8x128xf32>
    %6 = arith.addf %2, %5 : vector<8x128xf32>
    %c0_8 = arith.constant 0 : index
    %c0_9 = arith.constant 0 : index
    %7 = vector.load %arg5[%c0_8, %c0_9] : memref<1x128xf32, #tpu.memory_space<vmem>>, vector<1x128xf32>
    %8 = vector.broadcast %7 : vector<1x128xf32> to vector<8x128xf32>
    %9 = arith.addf %6, %8 : vector<8x128xf32>
    %cst_10 = arith.constant dense<0xFF800000> : vector<8xf32>
    %10 = vector.multi_reduction <maximumf>, %9, %cst_10 [1] : vector<8x128xf32> to vector<8xf32>
    %11 = vector.shape_cast %10 : vector<8xf32> to vector<8x1xf32>
    %12 = vector.broadcast %11 : vector<8x1xf32> to vector<8x128xf32>
    %13 = arith.subf %9, %12 : vector<8x128xf32>
    %14 = math.exp %13 : vector<8x128xf32>
    %cst_11 = arith.constant dense<0.000000e+00> : vector<8xf32>
    %15 = vector.multi_reduction <add>, %14, %cst_11 [1] : vector<8x128xf32> to vector<8xf32>
    %16 = vector.shape_cast %15 : vector<8xf32> to vector<8x1xf32>
    %17 = vector.broadcast %16 : vector<8x1xf32> to vector<8x128xf32>
    %18 = arith.divf %14, %17 : vector<8x128xf32>
    %c0_12 = arith.constant 0 : index
    %c0_13 = arith.constant 0 : index
    %19 = vector.load %arg6[%c0_12, %c0_13] : memref<8x128xf32, #tpu.memory_space<vmem>>, vector<8x128xf32>
    tpu.vector_store %arg6[%c0_12, %c0_13], %18 {strides = array<i32>} : memref<8x128xf32, #tpu.memory_space<vmem>>, vector<8x128xf32>,
    return
  }
  func.func @transform_0(%arg0: i32) -> (i32, i32) {
    %c0_i32 = arith.constant 0 : i32
    %c0_i32_0 = arith.constant 0 : i32
    return %arg0, %c0_i32 : i32, i32
  }
  func.func @transform_1(%arg0: i32) -> (i32, i32) {
    %c0_i32 = arith.constant 0 : i32
    %c0_i32_0 = arith.constant 0 : i32
    return %arg0, %c0_i32 : i32, i32
  }
  func.func @transform_2(%arg0: i32) -> (i32, i32) {
    %c0_i32 = arith.constant 0 : i32
    %c0_i32_0 = arith.constant 0 : i32
    %c0_i32_1 = arith.constant 0 : i32
    return %c0_i32, %c0_i32_0 : i32, i32
  }
  func.func @transform_3(%arg0: i32) -> (i32, i32) {
    %c0_i32 = arith.constant 0 : i32
    %c0_i32_0 = arith.constant 0 : i32
    %c0_i32_1 = arith.constant 0 : i32
    return %c0_i32, %c0_i32_0 : i32, i32
  }
  func.func @transform_4(%arg0: i32) -> (i32, i32) {
    %c0_i32 = arith.constant 0 : i32
    %c0_i32_0 = arith.constant 0 : i32
    %c0_i32_1 = arith.constant 0 : i32
    return %c0_i32, %c0_i32_0 : i32, i32
  }
  func.func @transform_5(%arg0: i32) -> (i32, i32) {
    %c0_i32 = arith.constant 0 : i32
    %c0_i32_0 = arith.constant 0 : i32
    return %arg0, %c0_i32 : i32, i32
  }
}

</mosaic_0001>

<bundles_post_ra>
// kernel: ae_context_avg.1
= control target key start
LH: loop header
LB: loop body
LE: loop exit
PB: predicated region body
PF: predicated region fallthrough
CT: control target
= control target key end

     0   :  { %vm30_vm0 = vcmask 261120   ;;  %s182_s3 = inlined_call_operand.vmem [shape: f32[32,128], index: 3, kind: input, shape index: {}]   ;;  %s183_s2 = inlined_call_operand.vmem [shape: f32[32,128], index: 2, kind: input, shape index: {}]   ;;  %s184_s1 = inlined_call_operand.vmem [shape: f32[8,32], index: 1, kind: input, shape index: {}]   ;;  %s185_s0 = inlined_call_operand.vmem [shape: f32[8,32], index: 0, kind: input, shape index: {}]   ;;  %s186_s4 = inlined_call_operand.vmem [shape: f32[1,128], index: 4, kind: input, shape index: {}]   ;;  %s187_s5 = inlined_call_operand.vmem [shape: f32[8,128], index: 5, kind: output, shape index: {}]  }
   0x1   :  { %v29_v0 = vld [vmem:[%s182_s3 + $0x18] sm:$0xff]  ;;  %v28_v2 = vld [vmem:[%s182_s3 + $0x10] sm:$0xff]  ;;  %v27_v4 = vld [vmem:[%s182_s3 + $0x8] sm:$0xff] }
   0x2   :  { %v24_v1 = vld [vmem:[%s183_s2 + $0x18] sm:$0xff]  ;;  %46 = vmatpush.msra.mxu0 %v29_v0  ;;  %v23_v3 = vld [vmem:[%s183_s2 + $0x10] sm:$0xff]  ;;  %v22_v5 = vld [vmem:[%s183_s2 + $0x8] sm:$0xff] }
   0x3   :  { %69 = vmatpush.msra.mxu1 %v24_v1  ;;  %v26_v6 = vld [vmem:[%s182_s3] sm:$0xff] }
   0x4   :  { %47 = vmatpush.msra.mxu0 %v28_v2  ;;  %v21_v7 = vld [vmem:[%s183_s2] sm:$0xff] }
   0x5   :  { %70 = vmatpush.msra.mxu1 %v23_v3  ;;  %v25_v8 = vld [vmem:[%s184_s1] sm:$0xff] }
   0x6   :  { %48 = vmatpush.msra.mxu0 %v27_v4  ;;  %v20_v9 = vld [vmem:[%s185_s0] sm:$0xff] }
   0x7   :  { %71 = vmatpush.msra.mxu1 %v22_v5  ;;  %v111_v10 = vld [vmem:[%s186_s4] ss:$0 sm:$0xff] }
   0x8   :  { %49 = vmatpush.msra.mxu0 %v26_v6 }
   0x9   :  { %72 = vmatpush.msra.mxu1 %v21_v7  ;;  %109 = vmatmul.msk.f32.vlgmr.msra.gmra.mxu0 %vm30_vm0, %v25_v8 }
   0xa   :  { %110 = vmatmul.msk.f32.vlgmr.msra.gmra.mxu1 %vm30_vm0, %v20_v9 }
  0x86   :  { %v51_v11 = vpop.f32.mrf.mxu0 }
  0x87   :  { %v74_v12 = vpop.f32.mrf.mxu1 }
  0x88   :  { %v75_v13 = vadd.f32 %v74_v12, %v51_v11 }
  0x8a   :  { %v81_v14 = vadd.f32 %v111_v10, %v75_v13 }
  0x8c   :  { %82 = vmax.xlane.f32.xlu0 %v81_v14 }
  0xff   :  { %v83_v15 = vpop.xlane.xlu0 %82 }
 0x100   :  { %v84_v16 = vsub.f32 %v81_v14, %v83_v15 }
 0x102   :  { %v85_v17 = vmul.f32 1.442695, %v84_v16 }
 0x104   :  { %112 = vpow2.f32 %v85_v17 }
 0x10a   :  { %v113_v18 = vpop.eup %112 }
 0x10b   :  { %87 = vadd.xlane.f32.xlu0 %v113_v18 }
 0x17e   :  { %v88_v19 = vpop.xlane.xlu0 %87 }
 0x17f   :  { %114 = vrcp.f32 %v88_v19  ;;  %v100_v23 = vand.u32 2147483648, %v88_v19  ;;  %v98_v25 = vand.u32 2147483647, %v88_v19  ;;  %vm94_vm2 = vweird.f32 %v88_v19 }
 0x181   :  { %v101_v27 = vor.u32 1.1754944e-38, %v100_v23  ;;  %vm99_vm4 = vcmp.eq.f32.partialorder %v98_v25, 8.507059e+37 }
 0x185   :  { %v115_v20 = vpop.eup %114 }
 0x186   :  { %v90_v21 = vmul.f32 %v115_v20, %v88_v19  ;;  %vm95_vm1 = vweird.f32 %v115_v20 }
 0x187   :  { %vm96_vm3 = vmor %vm94_vm2, %vm95_vm1 }
 0x188   :  { %v91_v22 = vsub.f32 1.0, %v90_v21 }
 0x18a   :  { %v92_v24 = vmul.f32 %v115_v20, %v91_v22 }
 0x18c   :  { %v93_v26 = vadd.f32 %v115_v20, %v92_v24 }
 0x18e   :  { %v97_v28 = vsel %vm96_vm3, %v115_v20, %v93_v26 }
 0x18f   :  { %v102_v29 = vsel %vm99_vm4, %v101_v27, %v97_v28 }
 0x190   :  { %v103_v30 = vmul.f32 %v113_v18, %v102_v29 }
 0x192   :  { %104 = vst [vmem:[%s187_s5] sm:$0xff] %v103_v30 }

</bundles_post_ra>
